<compile_context>
chip_gen: v7x
topology: tpu7x:2x2x1
jax: 0.10.0
libtpu: 0.0.40
codegen_flags: <defaults>
</compile_context>

<pallas_src>
import functools

import jax
import jax.numpy as jnp
import numpy as np
from jax.experimental import pallas as pl
from jax.experimental.pallas import tpu as pltpu

HID1 = 40
HID2 = 30


def critic_kernel(s_ref, a_ref, w1_ref, b1_ref, w2q_ref, w2a_ref, b2_ref,
                  w3_ref, b3_ref, out_ref):
    prec = jax.lax.Precision.HIGHEST

    # Layer 1: relu(state @ W1 + b1)                       (TB, HID1)
    q = jnp.dot(s_ref[...], w1_ref[...],
                preferred_element_type=jnp.float32, precision=prec)
    q = jnp.maximum(q + b1_ref[...], 0.0)

    # Layer 2: relu(cat([q, action]) @ W2 + b2), split form:
    #   cat([q, a]) @ W2 == q @ W2q + a @ W2a              (TB, HID2)
    h = jnp.dot(q, w2q_ref[...],
                preferred_element_type=jnp.float32, precision=prec)
    h = h + jnp.dot(a_ref[...], w2a_ref[...],
                    preferred_element_type=jnp.float32, precision=prec)
    h = jnp.maximum(h + b2_ref[...], 0.0)

    # Layer 3 on VPU/XLU: (TB, HID2) * (1, HID2) -> lane-reduce -> (TB, 1)
    out = jnp.sum(h * w3_ref[...], axis=-1, keepdims=True) + b3_ref[...]
    out_ref[...] = out.astype(out_ref.dtype)


def critic_forward(state, action, params, *, block_b=2048):
    """state: (B, state_dim) f32, action: (B, action_dim) f32 -> (B, 1) f32."""
    w1, b1, w2q, w2a, b2, w3_row, b3 = params
    B, SD = state.shape
    AD = action.shape[1]

    # Batch tile: multiple of 8, large enough to amortize per-grid-step
    # overhead, but capped near ceil(B/2) so the grid has >= 2 steps whenever
    # possible (v7x megacore sharding of the "parallel" axis).
    half = max(8, (((B + 1) // 2) + 7) // 8 * 8)
    TB = min(block_b, half)
    grid = (pl.cdiv(B, TB),)

    # VMEM budget from padded tile sizes (last dim pads to 128 lanes):
    # double-buffered input/output tiles + intermediates + resident weights.
    lane_pad = lambda n: ((n + 127) // 128) * 128
    in_bytes = 2 * TB * (lane_pad(SD) + lane_pad(AD)) * 4
    out_bytes = 2 * TB * 128 * 4
    interm_bytes = 4 * TB * 128 * 4
    weight_bytes = 1 << 20
    vmem_bytes = int(min(32 << 20,
                         max(8 << 20,
                             2 * (in_bytes + out_bytes + interm_bytes + weight_bytes))))

    return pl.pallas_call(
        critic_kernel,
        out_shape=jax.ShapeDtypeStruct((B, 1), jnp.float32),
        grid=grid,
        in_specs=[
            # activations: streamed over the batch grid
            pl.BlockSpec((TB, SD), lambda i: (i, 0)),
            pl.BlockSpec((TB, AD), lambda i: (i, 0)),
            # weights / biases: constant index map -> VMEM-resident across steps
            pl.BlockSpec(w1.shape, lambda i: (0, 0)),
            pl.BlockSpec(b1.shape, lambda i: (0, 0)),
            pl.BlockSpec(w2q.shape, lambda i: (0, 0)),
            pl.BlockSpec(w2a.shape, lambda i: (0, 0)),
            pl.BlockSpec(b2.shape, lambda i: (0, 0)),
            pl.BlockSpec(w3_row.shape, lambda i: (0, 0)),
            pl.BlockSpec(b3.shape, lambda i: (0, 0)),
        ],
        out_specs=pl.BlockSpec((TB, 1), lambda i: (i, 0)),
        compiler_params=pltpu.CompilerParams(
            dimension_semantics=("parallel",),   # megacore sharding on v7x
            vmem_limit_bytes=vmem_bytes,
        ),
    )(state, action, w1, b1, w2q, w2a, b2, w3_row, b3)


def init_params(key, state_dim, action_dim):
    """nn.Linear-style init: U(-1/sqrt(fan_in), +1/sqrt(fan_in))."""
    ks = jax.random.split(key, 6)

    def linear(kw, kb, fan_in, fan_out):
        bound = 1.0 / np.sqrt(fan_in)
        w = jax.random.uniform(kw, (fan_in, fan_out), jnp.float32, -bound, bound)
        b = jax.random.uniform(kb, (1, fan_out), jnp.float32, -bound, bound)
        return w, b

    w1, b1 = linear(ks[0], ks[1], state_dim, HID1)
    w2, b2 = linear(ks[2], ks[3], HID1 + action_dim, HID2)
    w3, b3 = linear(ks[4], ks[5], HID2, 1)

    # Split W2 into the part applied to q (first HID1 rows) and to action;
    # pass W3 as a (1, HID2) row for the VPU layer-3.
    w2q, w2a = w2[:HID1, :], w2[HID1:, :]
    w3_row = w3.T
    params = (w1, b1, w2q, w2a, b2, w3_row, b3)
    full = (w1, b1, w2, b2, w3, b3)
    return params, full


def reference_forward_np(state, action, full):
    """Float64 NumPy reference of the exact PyTorch forward."""
    w1, b1, w2, b2, w3, b3 = (np.asarray(t, np.float64) for t in full)
    s = np.asarray(state, np.float64)
    a = np.asarray(action, np.float64)
    q = np.maximum(s @ w1 + b1, 0.0)
    q = np.maximum(np.concatenate([q, a], axis=1) @ w2 + b2, 0.0)
    return q @ w3 + b3


if __name__ == "__main__":
    key = jax.random.PRNGKey(0)
    k_state, k_action, k_params, k_s2, k_a2 = jax.random.split(key, 5)

    batch, state_dim, action_dim = 8, 16, 4
    state = jax.random.normal(k_state, (batch, state_dim), dtype=jnp.float32)
    action = jax.random.normal(k_action, (batch, action_dim), dtype=jnp.float32)

    params, full = init_params(k_params, state_dim, action_dim)

    out = jax.block_until_ready(critic_forward(state, action, params))
    ref = reference_forward_np(state, action, full)
    np.testing.assert_allclose(np.asarray(out), ref, rtol=1e-4, atol=1e-4)

    # Batch not a multiple of the tile: exercises the partial final block
    # (no wrapper pad / slice passes).
    batch2 = 13
    s2 = jax.random.normal(k_s2, (batch2, state_dim), dtype=jnp.float32)
    a2 = jax.random.normal(k_a2, (batch2, action_dim), dtype=jnp.float32)
    out2 = jax.block_until_ready(critic_forward(s2, a2, params))
    ref2 = reference_forward_np(s2, a2, full)
    np.testing.assert_allclose(np.asarray(out2), ref2, rtol=1e-4, atol=1e-4)

    print("KERNEL_OK")
</pallas_src>

<mosaic_0001>
module attributes {stable_mosaic.version = 11 : i64} {
  func.func @critic_kernel(%arg0: i32, %arg1: memref<8x16xf32, #tpu.memory_space<vmem>>, %arg2: memref<8x4xf32, #tpu.memory_space<vmem>>, %arg3: memref<16x40xf32, #tpu.memory_space<vmem>>, %arg4: memref<1x40xf32, #tpu.memory_space<vmem>>, %arg5: memref<40x30xf32, #tpu.memory_space<vmem>>, %arg6: memref<4x30xf32, #tpu.memory_space<vmem>>, %arg7: memref<1x30xf32, #tpu.memory_space<vmem>>, %arg8: memref<1x30xf32, #tpu.memory_space<vmem>>, %arg9: memref<1x1xf32, #tpu.memory_space<vmem>>, %arg10: memref<8x1xf32, #tpu.memory_space<vmem>>) attributes {dimension_semantics = [#tpu.dimension_semantics<parallel>], iteration_bounds = array<i64: 1>, scalar_prefetch = 0 : i64, scratch_operands = 0 : i64, tpu.core_type = #tpu.core_type<tc>, window_params = [{transform_indices = @transform_0, window_bounds = array<i64: 8, 16>}, {transform_indices = @transform_1, window_bounds = array<i64: 8, 4>}, {pipeline_mode = #tpu.pipeline_mode<synchronous>, transform_indices = @transform_2, window_bounds = array<i64: 16, 40>}, {pipeline_mode = #tpu.pipeline_mode<synchronous>, transform_indices = @transform_3, window_bounds = array<i64: 1, 40>}, {pipeline_mode = #tpu.pipeline_mode<synchronous>, transform_indices = @transform_4, window_bounds = array<i64: 40, 30>}, {pipeline_mode = #tpu.pipeline_mode<synchronous>, transform_indices = @transform_5, window_bounds = array<i64: 4, 30>}, {pipeline_mode = #tpu.pipeline_mode<synchronous>, transform_indices = @transform_6, window_bounds = array<i64: 1, 30>}, {pipeline_mode = #tpu.pipeline_mode<synchronous>, transform_indices = @transform_7, window_bounds = array<i64: 1, 30>}, {pipeline_mode = #tpu.pipeline_mode<synchronous>, transform_indices = @transform_8, window_bounds = array<i64: 1, 1>}, {transform_indices = @transform_9, window_bounds = array<i64: 8, 1>}]} {
    %c0 = arith.constant 0 : index
    %c0_0 = arith.constant 0 : index
    %0 = vector.load %arg1[%c0, %c0_0] : memref<8x16xf32, #tpu.memory_space<vmem>>, vector<8x16xf32>
    %c0_1 = arith.constant 0 : index
    %c0_2 = arith.constant 0 : index
    %1 = vector.load %arg3[%c0_1, %c0_2] : memref<16x40xf32, #tpu.memory_space<vmem>>, vector<16x40xf32>
    %cst = arith.constant dense<0.000000e+00> : vector<8x40xf32>
    %2 = tpu.matmul %0, %1, %cst {dimension_numbers = #tpu.dot_dimension_numbers<[1], [0], [0], [1], [0, 0, 1, 1], [], []>, precision = #tpu.contract_precision<fp32>} : vector<8x16xf32>, vector<16x40xf32>, vector<8x40xf32> -> vector<8x40xf32>
    %c0_3 = arith.constant 0 : index
    %c0_4 = arith.constant 0 : index
    %3 = vector.load %arg4[%c0_3, %c0_4] : memref<1x40xf32, #tpu.memory_space<vmem>>, vector<1x40xf32>
    %4 = vector.broadcast %3 : vector<1x40xf32> to vector<8x40xf32>
    %5 = arith.addf %2, %4 : vector<8x40xf32>
    %cst_5 = arith.constant 0.000000e+00 : f32
    %6 = vector.broadcast %cst_5 : f32 to vector<8x40xf32>
    %7 = arith.maximumf %5, %6 : vector<8x40xf32>
    %c0_6 = arith.constant 0 : index
    %c0_7 = arith.constant 0 : index
    %8 = vector.load %arg5[%c0_6, %c0_7] : memref<40x30xf32, #tpu.memory_space<vmem>>, vector<40x30xf32>
    %cst_8 = arith.constant dense<0.000000e+00> : vector<8x30xf32>
    %9 = tpu.matmul %7, %8, %cst_8 {dimension_numbers = #tpu.dot_dimension_numbers<[1], [0], [0], [1], [0, 0, 1, 1], [], []>, precision = #tpu.contract_precision<fp32>} : vector<8x40xf32>, vector<40x30xf32>, vector<8x30xf32> -> vector<8x30xf32>
    %c0_9 = arith.constant 0 : index
    %c0_10 = arith.constant 0 : index
    %10 = vector.load %arg2[%c0_9, %c0_10] : memref<8x4xf32, #tpu.memory_space<vmem>>, vector<8x4xf32>
    %c0_11 = arith.constant 0 : index
    %c0_12 = arith.constant 0 : index
    %11 = vector.load %arg6[%c0_11, %c0_12] : memref<4x30xf32, #tpu.memory_space<vmem>>, vector<4x30xf32>
    %cst_13 = arith.constant dense<0.000000e+00> : vector<8x30xf32>
    %12 = tpu.matmul %10, %11, %cst_13 {dimension_numbers = #tpu.dot_dimension_numbers<[1], [0], [0], [1], [0, 0, 1, 1], [], []>, precision = #tpu.contract_precision<fp32>} : vector<8x4xf32>, vector<4x30xf32>, vector<8x30xf32> -> vector<8x30xf32>
    %13 = arith.addf %9, %12 : vector<8x30xf32>
    %c0_14 = arith.constant 0 : index
    %c0_15 = arith.constant 0 : index
    %14 = vector.load %arg7[%c0_14, %c0_15] : memref<1x30xf32, #tpu.memory_space<vmem>>, vector<1x30xf32>
    %15 = vector.broadcast %14 : vector<1x30xf32> to vector<8x30xf32>
    %16 = arith.addf %13, %15 : vector<8x30xf32>
    %cst_16 = arith.constant 0.000000e+00 : f32
    %17 = vector.broadcast %cst_16 : f32 to vector<8x30xf32>
    %18 = arith.maximumf %16, %17 : vector<8x30xf32>
    %c0_17 = arith.constant 0 : index
    %c0_18 = arith.constant 0 : index
    %19 = vector.load %arg8[%c0_17, %c0_18] : memref<1x30xf32, #tpu.memory_space<vmem>>, vector<1x30xf32>
    %20 = vector.broadcast %19 : vector<1x30xf32> to vector<8x30xf32>
    %21 = arith.mulf %18, %20 : vector<8x30xf32>
    %cst_19 = arith.constant dense<0.000000e+00> : vector<8xf32>
    %22 = vector.multi_reduction <add>, %21, %cst_19 [1] : vector<8x30xf32> to vector<8xf32>
    %23 = vector.shape_cast %22 : vector<8xf32> to vector<8x1xf32>
    %c0_20 = arith.constant 0 : index
    %c0_21 = arith.constant 0 : index
    %24 = vector.load %arg9[%c0_20, %c0_21] : memref<1x1xf32, #tpu.memory_space<vmem>>, vector<1x1xf32>
    %25 = vector.broadcast %24 : vector<1x1xf32> to vector<8x1xf32>
    %26 = arith.addf %23, %25 : vector<8x1xf32>
    %c0_22 = arith.constant 0 : index
    %c0_23 = arith.constant 0 : index
    %27 = vector.load %arg10[%c0_22, %c0_23] : memref<8x1xf32, #tpu.memory_space<vmem>>, vector<8x1xf32>
    tpu.vector_store %arg10[%c0_22, %c0_23], %26 {strides = array<i32>} : memref<8x1xf32, #tpu.memory_space<vmem>>, vector<8x1xf32>,
    return
  }
  func.func @transform_0(%arg0: i32) -> (i32, i32) {
    %c0_i32 = arith.constant 0 : i32
    %c0_i32_0 = arith.constant 0 : i32
    return %arg0, %c0_i32 : i32, i32
  }
  func.func @transform_1(%arg0: i32) -> (i32, i32) {
    %c0_i32 = arith.constant 0 : i32
    %c0_i32_0 = arith.constant 0 : i32
    return %arg0, %c0_i32 : i32, i32
  }
  func.func @transform_2(%arg0: i32) -> (i32, i32) {
    %c0_i32 = arith.constant 0 : i32
    %c0_i32_0 = arith.constant 0 : i32
    %c0_i32_1 = arith.constant 0 : i32
    return %c0_i32, %c0_i32_0 : i32, i32
  }
  func.func @transform_3(%arg0: i32) -> (i32, i32) {
    %c0_i32 = arith.constant 0 : i32
    %c0_i32_0 = arith.constant 0 : i32
    %c0_i32_1 = arith.constant 0 : i32
    return %c0_i32, %c0_i32_0 : i32, i32
  }
  func.func @transform_4(%arg0: i32) -> (i32, i32) {
    %c0_i32 = arith.constant 0 : i32
    %c0_i32_0 = arith.constant 0 : i32
    %c0_i32_1 = arith.constant 0 : i32
    return %c0_i32, %c0_i32_0 : i32, i32
  }
  func.func @transform_5(%arg0: i32) -> (i32, i32) {
    %c0_i32 = arith.constant 0 : i32
    %c0_i32_0 = arith.constant 0 : i32
    %c0_i32_1 = arith.constant 0 : i32
    return %c0_i32, %c0_i32_0 : i32, i32
  }
  func.func @transform_6(%arg0: i32) -> (i32, i32) {
    %c0_i32 = arith.constant 0 : i32
    %c0_i32_0 = arith.constant 0 : i32
    %c0_i32_1 = arith.constant 0 : i32
    return %c0_i32, %c0_i32_0 : i32, i32
  }
  func.func @transform_7(%arg0: i32) -> (i32, i32) {
    %c0_i32 = arith.constant 0 : i32
    %c0_i32_0 = arith.constant 0 : i32
    %c0_i32_1 = arith.constant 0 : i32
    return %c0_i32, %c0_i32_0 : i32, i32
  }
  func.func @transform_8(%arg0: i32) -> (i32, i32) {
    %c0_i32 = arith.constant 0 : i32
    %c0_i32_0 = arith.constant 0 : i32
    %c0_i32_1 = arith.constant 0 : i32
    return %c0_i32, %c0_i32_0 : i32, i32
  }
  func.func @transform_9(%arg0: i32) -> (i32, i32) {
    %c0_i32 = arith.constant 0 : i32
    %c0_i32_0 = arith.constant 0 : i32
    return %arg0, %c0_i32 : i32, i32
  }
}

</mosaic_0001>

<bundles_post_ra>
// kernel: tpu_custom_call.1
= control target key start
LH: loop header
LB: loop body
LE: loop exit
PB: predicated region body
PF: predicated region fallthrough
CT: control target
= control target key end

     0   :  { %vm44_vm0 = vcmask 130048   ;;  %v1794_v0 = vmov 0.0|0.0   ;;  %vm1795_vm1 = vmmov 0   ;;  %v1796_v3 = vmov 0.0   ;;  %s2033_s2 = inlined_call_operand.vmem [shape: f32[16,40], index: 2, kind: input, shape index: {}]   ;;  %s2034_s0 = inlined_call_operand.vmem [shape: f32[8,16], index: 0, kind: input, shape index: {}]   ;;  %s2035_s5 = inlined_call_operand.vmem [shape: f32[4,30], index: 5, kind: input, shape index: {}]   ;;  %s2036_s1 = inlined_call_operand.vmem [shape: f32[8,4], index: 1, kind: input, shape index: {}]   ;;  %s2037_s4 = inlined_call_operand.vmem [shape: f32[40,30], index: 4, kind: input, shape index: {}]   ;;  %s2038_s3 = inlined_call_operand.vmem [shape: f32[1,40], index: 3, kind: input, shape index: {}]   ;;  %s2039_s8 = inlined_call_operand.<no memory space> [shape: f32[1,1], index: 8, kind: input, shape index: {}]   ;;  %s2040_s6 = inlined_call_operand.vmem [shape: f32[1,30], index: 6, kind: input, shape index: {}]   ;;  %s2041_s7 = inlined_call_operand.vmem [shape: f32[1,30], index: 7, kind: input, shape index: {}]   ;;  %s2042_s9 = inlined_call_operand.vmem [shape: f32[8,1], index: 9, kind: output, shape index: {}]  }
   0x1   :  { %1726 = vmatprep.subr.bf16.mxu0 %v1794_v0  ;;  %v35_v1 = vld [vmem:[%s2033_s2] sm:$0xff]  ;;  %v36_v2 = vld [vmem:[%s2033_s2 + $0x8] sm:$0xff]  ;;  %1580 = vmatprep.mubr.msk.f32.mxu0 %vm1795_vm1, %v1796_v3  ;;  %vm519_vm2 = vcmask 1043456   ;;  %vm515_vm3 = vcmask 31744   ;;  %v510_v52 = vld [vmem:[%s2037_s4 + $0x10] sm:$0xff]  ;;  %vm969_vm4 = vcmask 326656  }
   0x2   :  { %v34_v4 = vld [vmem:[%s2034_s0] sm:$0xff]  ;;  %v49_v5 = vand.u32 4294901760, %v35_v1  ;;  %v52_v6 = vand.u32 4294901760, %v36_v2  ;;  %1618 = vmatprep.subr.mxu1 %v1796_v3  ;;  %1620 = vmatprep.mubr.msk.f32.mxu1 %vm1795_vm1, %v1796_v3  ;;  %v509_v39 = vld [vmem:[%s2037_s4 + $0x8] sm:$0xff]  ;;  %v511_v53 = vld [vmem:[%s2037_s4 + $0x18] sm:$0xff]  ;;  %v980_v54 = vand.u32 4294901760, %v510_v52 }
   0x3   :  { %v46_v7 = vsel %vm44_vm0, %v34_v4, 0  ;;  %v514_v8 = vld [vmem:[%s2035_s5] sm:$0xf]  ;;  %v977_v41 = vand.u32 4294901760, %v509_v39  ;;  %v983_v55 = vand.u32 4294901760, %v511_v53  ;;  %vm1488_vm5 = vcmask 244736  }
   0x4   :  { %v513_v9 = vld [vmem:[%s2036_s1] sm:$0xff]  ;;  %v1868_v10 = vand.u32 4294901760, %v46_v7  ;;  %v521_v11 = vsel %vm519_vm2, %v514_v8, 0  ;;  %v1870_v13 = vpack.c.bf16 %v52_v6, %v49_v5  ;;  %v1872_v14 = vsub.f32 %v35_v1, %v49_v5 }
   0x5   :  { %v517_v12 = vsel %vm515_vm3, %v513_v9, 0  ;;  %v1874_v15 = vsub.f32 %v36_v2, %v52_v6  ;;  %v524_v16 = vand.u32 4294901760, %v521_v11  ;;  %v508_v38 = vld [vmem:[%s2037_s4] sm:$0xff]  ;;  %v1930_v44 = vsub.f32 %v509_v39, %v977_v41 }
   0x6   :  { %v1877_v17 = vsub.f32 %v46_v7, %v1868_v10  ;;  %v1879_v18 = vand.u32 4294901760, %v517_v12  ;;  %1728 = vmatpush3.bf16.msra.mxu0 %v1870_v13  ;;  %v128_v19 = vand.u32 4294901760, %v1872_v14  ;;  %v974_v40 = vand.u32 4294901760, %v508_v38  ;;  %v512_v60 = vld [vmem:[%s2037_s4 + $0x20] sm:$0xff] }
   0x7   :  { %v135_v20 = vand.u32 4294901760, %v1874_v15  ;;  %1619 = vmatpush3.msra.mxu1 %v524_v16  ;;  %v601_v21 = vsub.f32 %v521_v11, %v524_v16  ;;  %1729 = vmatprep.subr.bf16.mxu0 %v1794_v0  ;;  %v1733_v37 = vpack.c.bf16 %v1874_v15, %v1872_v14  ;;  %v1063_v46 = vand.u32 4294901760, %v1930_v44 }
   0x8   :  { %v117_v22 = vand.u32 4294901760, %v1877_v17  ;;  %v590_v23 = vsub.f32 %v517_v12, %v1879_v18  ;;  %1623 = vmatprep.subr.mxu1 %v1796_v3  ;;  %v129_v24 = vsub.f32 %v1872_v14, %v128_v19  ;;  %v1928_v43 = vsub.f32 %v508_v38, %v974_v40 }
   0x9   :  { %v136_v25 = vsub.f32 %v1874_v15, %v135_v20  ;;  %v602_v26 = vand.u32 4294901760, %v601_v21  ;;  %v1739_v42 = vpack.c.bf16 %v135_v20, %v128_v19  ;;  %v1064_v48 = vsub.f32 %v1930_v44, %v1063_v46 }
   0xa   :  { %v118_v27 = vsub.f32 %v1877_v17, %v117_v22  ;;  %v591_v28 = vand.u32 4294901760, %v590_v23  ;;  %v130_v29 = vand.u32 4294901760, %v129_v24  ;;  %v1056_v45 = vand.u32 4294901760, %v1928_v43 }
   0xb   :  { %v137_v30 = vand.u32 4294901760, %v136_v25  ;;  %v603_v31 = vsub.f32 %v601_v21, %v602_v26  ;;  %v1065_v50 = vand.u32 4294901760, %v1064_v48  ;;  %v1961_v56 = vsub.f32 %v510_v52, %v980_v54 }
   0xc   :  { %v119_v32 = vand.u32 4294901760, %v118_v27  ;;  %v592_v33 = vsub.f32 %v590_v23, %v591_v28  ;;  %v1057_v47 = vsub.f32 %v1928_v43, %v1056_v45  ;;  %v1963_v57 = vsub.f32 %v511_v53, %v983_v55 }
   0xd   :  { %v1730_v34 = vpack.c.bf16 %v137_v30, %v130_v29  ;;  %v604_v35 = vand.u32 4294901760, %v603_v31  ;;  %v1070_v58 = vand.u32 4294901760, %v1961_v56  ;;  %v1972_v63 = vand.u32 4294901760, %v512_v60  ;;  %v1506_v30 = vld [vmem:[%s2038_s3] ss:$0 sm:$0xff] }
   0xe   :  { %1581 = vmatmul.mubr.f32.vlgmr.msra.gmra.mrb[0].mxu0 %v119_v32  ;;  %v593_v36 = vand.u32 4294901760, %v592_v33  ;;  %v1058_v49 = vand.u32 4294901760, %v1057_v47  ;;  %v1077_v59 = vand.u32 4294901760, %v1963_v57  ;;  %v1745_v8 = vpack.c.bf16 %v977_v41, %v974_v40 }
   0xf   :  { %1731 = vmatpush3.bf16.msra.mxu0 %v1730_v34  ;;  %1587 = vmatprep.mubr.msk.f32.mxu0 %vm1795_vm1, %v1796_v3  ;;  %v1071_v61 = vsub.f32 %v1961_v56, %v1070_v58  ;;  %v1975_v4 = vsub.f32 %v512_v60, %v1972_v63  ;;  %v1760_v11 = vpack.c.bf16 %v1963_v57, %v1961_v56  ;;  %vm1500_vm6 = vcmask 7168  }
  0x10   :  { %1732 = vmatprep.subr.bf16.mxu0 %v1794_v0  ;;  %1621 = vmatmul.mubr.f32.vlgmr.msra.gmra.mrb[0].mxu1 %v593_v36  ;;  %v1751_v51 = vpack.c.bf16 %v1065_v50, %v1058_v49  ;;  %v1078_v62 = vsub.f32 %v1963_v57, %v1077_v59  ;;  %v1772_v12 = vpack.c.bf16 %v1077_v59, %v1070_v58  ;;  %v1507_v59 = vld [vmem:[%s2040_s6] ss:$0 sm:$0xff] }
  0x11   :  { %1624 = vmatpush3.msra.mxu1 %v604_v35  ;;  %1625 = vmatprep.mubr.msk.f32.mxu1 %vm1795_vm1, %v1796_v3  ;;  %v1072_v1 = vand.u32 4294901760, %v1071_v61  ;;  %v1084_v6 = vand.u32 4294901760, %v1975_v4  ;;  %v1757_v40 = vpack.c.bf16 %v1930_v44, %v1928_v43  ;;  %v14_v43 = vstv %s2039_s8 }
  0x12   :  { %1628 = vmatprep.subr.mxu1 %v1796_v3  ;;  %v1079_v2 = vand.u32 4294901760, %v1078_v62  ;;  %15 = vst [vmem:[#allocation2] sm:$0x1] %v14_v43  ;;  %v1508_v62 = vld [vmem:[%s2041_s7] ss:$0 sm:$0xff] }
  0x13   :  { %v1085_v7 = vsub.f32 %v1975_v4, %v1084_v6 }
  0x14   :  { %1626 = vmatmul.mubr.f32.vlgmr.msra.gmra.mrb[2].mxu1 %v1879_v18  ;;  %v1754_v5 = vpack.c.bf16 %v1079_v2, %v1072_v1 }
  0x15   :  { %1629 = vmatpush3.msra.mxu1 %v601_v21  ;;  %1630 = vmatprep.mubr.msk.f32.mxu1 %vm1795_vm1, %v1796_v3  ;;  %v1086_v9 = vand.u32 4294901760, %v1085_v7 }
  0x16   :  { %1588 = vmatmul.mubr.f32.vlgmr.msra.gmra.mrb[0].mxu0 %v1868_v10  ;;  %1633 = vmatprep.subr.mxu1 %v1796_v3 }
  0x17   :  { %1734 = vmatpush3.bf16.msra.mxu0 %v1733_v37  ;;  %1594 = vmatprep.mubr.msk.f32.mxu0 %vm1795_vm1, %v1796_v3 }
  0x18   :  { %1735 = vmatprep.subr.bf16.mxu0 %v1794_v0  ;;  %1631 = vmatmul.mubr.f32.vlgmr.msra.gmra.mrb[4].mxu1 %v590_v23 }
  0x19   :  { %1634 = vmatpush3.msra.mxu1 %v524_v16  ;;  %1635 = vmatprep.mubr.msk.f32.mxu1 %vm1795_vm1, %v1796_v3 }
  0x1a   :  { %1638 = vmatprep.subr.mxu1 %v1796_v3 }
  0x1c   :  { %1636 = vmatmul.mubr.f32.vlgmr.msra.gmra.mrb[6].mxu1 %v591_v28 }
  0x1d   :  { %1639 = vmatpush3.msra.mxu1 %v602_v26  ;;  %1640 = vmatprep.mubr.msk.f32.mxu1 %vm1795_vm1, %v1796_v3 }
  0x1e   :  { %1595 = vmatmul.mubr.f32.vlgmr.msra.gmra.mrb[0].mxu0 %v1877_v17  ;;  %1643 = vmatprep.subr.mxu1 %v1796_v3 }
  0x1f   :  { %1737 = vmatpush3.bf16.msra.mxu0 %v1870_v13  ;;  %1601 = vmatprep.mubr.msk.f32.mxu0 %vm1795_vm1, %v1796_v3 }
  0x20   :  { %1738 = vmatprep.subr.bf16.mxu0 %v1794_v0  ;;  %1641 = vmatmul.mubr.f32.vlgmr.msra.gmra.mrb[8].mxu1 %v1879_v18 }
  0x21   :  { %1644 = vmatpush3.msra.mxu1 %v524_v16  ;;  %1645 = vmatprep.mubr.msk.f32.mxu1 %vm1795_vm1, %v1796_v3 }
  0x22   :  { %1744 = vmatprep.subr.bf16.mxu1 %v1794_v0 }
  0x24   :  { %1646 = vmatmul.mubr.f32.vlgmr.msra.gmra.mrb[10].mxu1 %v1879_v18 }
  0x25   :  { %1658 = vmatprep.mubr.msk.f32.mxu1 %vm1795_vm1, %v1796_v3  ;;  %1746 = vmatpush3.bf16.msra.mxu1 %v1745_v8 }
  0x26   :  { %1602 = vmatmul.mubr.f32.vlgmr.msra.gmra.mrb[0].mxu0 %v117_v22  ;;  %1747 = vmatprep.subr.bf16.mxu1 %v1794_v0 }
  0x27   :  { %1740 = vmatpush3.bf16.msra.mxu0 %v1739_v42  ;;  %1608 = vmatprep.mubr.msk.f32.mxu0 %vm1795_vm1, %v1796_v3  ;;  %v1769_v42 = vpack.c.bf16 %v1063_v46, %v1056_v45 }
  0x28   :  { %1741 = vmatprep.subr.bf16.mxu0 %v1794_v0 }
  0x2e   :  { %1609 = vmatmul.mubr.f32.vlgmr.msra.gmra.mrb[0].mxu0 %v1868_v10 }
  0x2f   :  { %1743 = vmatpush3.bf16.msra.mxu0 %v1870_v13  ;;  %1615 = vmatprep.mubr.msk.f32.mxu0 %vm1795_vm1, %v1796_v3 }
  0x30   :  { %1750 = vmatprep.subr.bf16.mxu0 %v1794_v0 }
  0x36   :  { %1616 = vmatmul.mubr.f32.vlgmr.msra.gmra.mrb[0].mxu0 %v1868_v10  ;;  %v1748_v10 = vpack.c.bf16 %v983_v55, %v980_v54 }
  0x37   :  { %1752 = vmatpush3.bf16.msra.mxu0 %v1751_v51  ;;  %1671 = vmatprep.mubr.msk.f32.mxu0 %vm1795_vm1, %v1796_v3 }
  0x38   :  { %1753 = vmatprep.subr.bf16.mxu0 %v1794_v0  ;;  %1749 = vmatpush3.bf16.msra.mxu1 %v1748_v10 }
  0x39   :  { %1656 = vmatprep.subr.mxu1 %v1796_v3 }
  0x3b   :  { %1755 = vmatpush3.bf16.msra.mxu0 %v1754_v5 }
  0x3c   :  { %1669 = vmatprep.subr.mxu0 %v1796_v3  ;;  %1657 = vmatpush3.msra.mxu1 %v1972_v63 }
  0x3d   :  { %1756 = vmatprep.subr.bf16.mxu1 %v1794_v0 }
  0x3f   :  { %1670 = vmatpush3.msra.mxu0 %v1086_v9 }
  0x40   :  { %1762 = vmatprep.subr.bf16.mxu0 %v1794_v0 }
  0xe3   :  { %v595_v13 = vpop.f32.mrb[0].mxu1 }
  0xe4   :  { %v1622_v14 = vpop.f32.mrb[1].mxu1 }
  0xe7   :  { %v671_v15 = vpop.f32.mrb[2].mxu1 }
  0xe8   :  { %v672_v16 = vadd.f32 %v671_v15, %v595_v13  ;;  %v1627_v17 = vpop.f32.mrb[3].mxu1 }
  0xeb   :  { %v745_v18 = vpop.f32.mrb[4].mxu1 }
  0xec   :  { %v746_v19 = vadd.f32 %v745_v18, %v672_v16  ;;  %v1632_v20 = vpop.f32.mrb[5].mxu1 }
  0xef   :  { %v819_v21 = vpop.f32.mrb[6].mxu1 }
  0xf0   :  { %v820_v22 = vadd.f32 %v819_v21, %v746_v19  ;;  %v1637_v23 = vpop.f32.mrb[7].mxu1 }
  0xf3   :  { %v893_v24 = vpop.f32.mrb[8].mxu1 }
  0xf4   :  { %v894_v25 = vadd.f32 %v893_v24, %v820_v22  ;;  %v1642_v26 = vpop.f32.mrb[9].mxu1 }
  0xf7   :  { %v965_v27 = vpop.f32.mrb[10].mxu1 }
  0xf8   :  { %v966_v28 = vadd.f32 %v965_v27, %v894_v25  ;;  %v1647_v29 = vpop.f32.mrb[11].mxu1 }
 0x109   :  { %v503_v31 = vpop.f32.mrb[0].mxu0 }
 0x10a   :  { %v1780_v32 = vadd.f32 %v1506_v30, %v503_v31  ;;  %v1617_v33 = vpop.f32.mrb[1].mxu0 }
 0x10c   :  { %v507_v34 = vmax.f32 %v1780_v32, 0.0 }
 0x10e   :  { %v971_v35 = vsel %vm969_vm4, %v507_v34, 0 }
 0x10f   :  { %v1043_v36 = vand.u32 4294901760, %v971_v35 }
 0x111   :  { %v1044_v37 = vsub.f32 %v971_v35, %v1043_v36  ;;  %1672 = vmatmul.mubr.f32.vlgmr.msra.gmra.mrb[2].mxu0 %v1043_v36 }
 0x112   :  { %1764 = vmatpush3.bf16.msra.mxu0 %v1745_v8  ;;  %1697 = vmatprep.mubr.msk.f32.mxu0 %vm1795_vm1, %v1796_v3 }
 0x113   :  { %v1045_v38 = vand.u32 4294901760, %v1044_v37  ;;  %1765 = vmatprep.subr.bf16.mxu0 %v1794_v0 }
 0x115   :  { %v1046_v39 = vsub.f32 %v1044_v37, %v1045_v38 }
 0x116   :  { %1767 = vmatpush3.bf16.msra.mxu0 %v1748_v10 }
 0x117   :  { %1695 = vmatprep.subr.mxu0 %v1796_v3  ;;  %v1047_v41 = vand.u32 4294901760, %v1046_v39 }
 0x119   :  { %1659 = vmatmul.mubr.f32.vlgmr.msra.gmra.mrb[12].mxu1 %v1047_v41 }
 0x11a   :  { %1758 = vmatpush3.bf16.msra.mxu1 %v1757_v40  ;;  %1696 = vmatpush3.msra.mxu0 %v1972_v63 }
 0x11b   :  { %1698 = vmatmul.mubr.f32.vlgmr.msra.gmra.mrb[4].mxu0 %v1045_v38  ;;  %1774 = vmatprep.subr.bf16.mxu0 %v1794_v0 }
 0x11c   :  { %1776 = vmatpush3.bf16.msra.mxu0 %v1745_v8  ;;  %1759 = vmatprep.subr.bf16.mxu1 %v1794_v0 }
 0x11d   :  { %1777 = vmatprep.subr.bf16.mxu0 %v1794_v0  ;;  %1684 = vmatprep.mubr.msk.f32.mxu1 %vm1795_vm1, %v1796_v3 }
 0x11e   :  { %1761 = vmatpush3.bf16.msra.mxu1 %v1760_v11  ;;  %1723 = vmatprep.mubr.msk.f32.mxu0 %vm1795_vm1, %v1796_v3 }
 0x11f   :  { %1682 = vmatprep.subr.mxu1 %v1796_v3 }
 0x120   :  { %1779 = vmatpush3.bf16.msra.mxu0 %v1748_v10 }
 0x121   :  { %1721 = vmatprep.subr.mxu0 %v1796_v3 }
 0x122   :  { %1683 = vmatpush3.msra.mxu1 %v1975_v4  ;;  %v1509_v4 = vld [vmem:[#allocation2] ss:$0 sm:$0xff] }
 0x123   :  { %1685 = vmatmul.mubr.f32.vlgmr.msra.gmra.mrb[14].mxu1 %v1044_v37  ;;  %1768 = vmatprep.subr.bf16.mxu1 %v1794_v0 }
 0x124   :  { %1770 = vmatpush3.bf16.msra.mxu1 %v1769_v42  ;;  %1722 = vmatpush3.msra.mxu0 %v1972_v63 }
 0x125   :  { %1724 = vmatmul.mubr.f32.vlgmr.msra.gmra.mrb[6].mxu0 %v1043_v36  ;;  %1771 = vmatprep.subr.bf16.mxu1 %v1794_v0 }
 0x126   :  { %1710 = vmatprep.mubr.msk.f32.mxu1 %vm1795_vm1, %v1796_v3 }
 0x128   :  { %1773 = vmatpush3.bf16.msra.mxu1 %v1772_v12 }
 0x129   :  { %1708 = vmatprep.subr.mxu1 %v1796_v3 }
 0x12c   :  { %1709 = vmatpush3.msra.mxu1 %v1084_v6 }
 0x12d   :  { %1711 = vmatmul.mubr.f32.vlgmr.msra.gmra.mrb[16].mxu1 %v1043_v36 }
 0x1e4   :  { %v1145_v44 = vpop.f32.mrb[2].mxu0 }
 0x1e5   :  { %v1673_v45 = vpop.f32.mrb[3].mxu0 }
 0x1ec   :  { %v1049_v46 = vpop.f32.mrb[12].mxu1 }
 0x1ed   :  { %v1050_v47 = vadd.f32 %v1049_v46, %v966_v28  ;;  %v1660_v0 = vpop.f32.mrb[13].mxu1 }
 0x1ee   :  { %v1305_v48 = vpop.f32.mrb[4].mxu0 }
 0x1ef   :  { %v1699_v49 = vpop.f32.mrb[5].mxu0  ;;  %v1146_v50 = vadd.f32 %v1145_v44, %v1050_v47 }
 0x1f6   :  { %v1227_v51 = vpop.f32.mrb[14].mxu1 }
 0x1f7   :  { %v1228_v52 = vadd.f32 %v1227_v51, %v1146_v50  ;;  %v1686_v3 = vpop.f32.mrb[15].mxu1 }
 0x1f8   :  { %v1467_v53 = vpop.f32.mrb[6].mxu0 }
 0x1f9   :  { %v1725_v54 = vpop.f32.mrb[7].mxu0  ;;  %v1306_v55 = vadd.f32 %v1305_v48, %v1228_v52 }
 0x200   :  { %v1391_v56 = vpop.f32.mrb[16].mxu1 }
 0x201   :  { %v1392_v57 = vadd.f32 %v1391_v56, %v1306_v55  ;;  %v1712_v58 = vpop.f32.mrb[17].mxu1 }
 0x203   :  { %v1468_v60 = vadd.f32 %v1467_v53, %v1392_v57 }
 0x205   :  { %v1478_v61 = vadd.f32 %v1507_v59, %v1468_v60 }
 0x207   :  { %v1479_v63 = vmax.f32 %v1478_v61, 0.0 }
 0x209   :  { %v1487_v1 = vmul.f32 %v1508_v62, %v1479_v63 }
 0x20b   :  { %v1489_v2 = vsel %vm1488_vm5, %v1487_v1, 0.0 }
 0x20c   :  { %1490 = vadd.xlane.f32.xlu0 %v1489_v2 }
 0x299   :  { %v1491_v5 = vpop.xlane.xlu0 %1490 }
 0x29a   :  { %v1499_v6 = vadd.f32 %v1509_v4, %v1491_v5 }
 0x29c   :  { %1501 = vst.msk [vmem:[%s2042_s9] sm:$0xff] %vm1500_vm6, %v1499_v6 }

</bundles_post_ra>
